<compile_context>
chip_gen: v7x
topology: tpu7x:2x2x1
jax: 0.10.0
libtpu: 0.0.40
codegen_flags: <defaults>
</compile_context>

<pallas_src>
import functools
import math

import jax
import jax.numpy as jnp
from jax.experimental import pallas as pl
from jax.experimental.pallas import tpu as pltpu

EPS = 1e-5  # nn.BatchNorm1d default eps


# --------------------------------------------------------------------------- #
# Kernels
# --------------------------------------------------------------------------- #
def _fused_small_kernel(x_ref, m_ref, w_ref, b_ref, o_ref, *, eps):
    """Single-block fused path: stats + normalization in one kernel."""
    x = x_ref[...].astype(jnp.float32)           # (N, C)
    m = m_ref[...].astype(jnp.float32)           # (N, C)
    s0 = jnp.sum(m, axis=0, keepdims=True)       # (1, C)
    mean = jnp.sum(m * x, axis=0, keepdims=True) / s0
    d = (x - mean) * m                           # mask inside the square
    var = jnp.sum(d * d, axis=0, keepdims=True) / s0
    istd = jax.lax.rsqrt(var + eps)              # EUP
    xn = w_ref[...] * ((x - mean) * istd) + b_ref[...]
    # out = xn*m + x*(1-m) == x + m*(xn - x)
    o_ref[...] = (x + m * (xn - x)).astype(o_ref.dtype)


def _stats_kernel(x_ref, m_ref, s_ref, *, r_valid, row_tile, bool_mask,
                  need_row_mask):
    """Pass 1: accumulate masked moments into one (n_sums, L) resident block."""
    i = pl.program_id(1)                         # row-tile index within this core

    @pl.when(i == 0)
    def _init():
        s_ref[...] = jnp.zeros_like(s_ref)

    x = x_ref[...].astype(jnp.float32)           # (TR, L)
    m = m_ref[...].astype(jnp.float32)           # (TR, L)

    if need_row_mask:
        # Zero contributions from the ragged tail of the last real tile and from
        # the phantom tile of the 2-way core split (its DMA index is clamped in
        # the wrapper's index_map, so the data read there is valid but stale).
        tile_idx = pl.program_id(0) * pl.num_programs(1) + i
        row0 = tile_idx * row_tile
        rows = row0 + jax.lax.broadcasted_iota(jnp.int32, x.shape, 0)
        valid = rows < r_valid
        m = jnp.where(valid, m, 0.0)
        x = jnp.where(valid, x, 0.0)

    mx = m * x
    parts = [jnp.sum(m, axis=0, keepdims=True),        # S0 = Σ m
             jnp.sum(mx, axis=0, keepdims=True)]       # S1 = Σ m x
    if bool_mask:
        # 0/1 mask => m**2 == m: only one more moment is needed.
        parts.append(jnp.sum(mx * x, axis=0, keepdims=True))   # S4 = Σ m x²
    else:
        m2 = m * m
        parts.append(jnp.sum(m2, axis=0, keepdims=True))        # S2 = Σ m²
        parts.append(jnp.sum(m2 * x, axis=0, keepdims=True))    # S3 = Σ m² x
        parts.append(jnp.sum(mx * mx, axis=0, keepdims=True))   # S4 = Σ m² x²

    s_ref[...] += jnp.concatenate(parts, axis=0)[None]          # (1, n_sums, L)


def _apply_kernel(x_ref, m_ref, p_ref, o_ref):
    """Pass 2: out = x + m * (scale*x + shift - x) with folded affine params."""
    x = x_ref[...].astype(jnp.float32)           # (TR, L)
    m = m_ref[...].astype(jnp.float32)           # (TR, L)
    p = p_ref[...]                               # (2, L): [scale; shift], f32
    xn = x * p[0:1, :] + p[1:2, :]
    o_ref[...] = (x + m * (xn - x)).astype(o_ref.dtype)


# --------------------------------------------------------------------------- #
# Wrapper
# --------------------------------------------------------------------------- #
def _round_up(a, b):
    return ((a + b - 1) // b) * b


def masked_batch_norm(x, mask, weight, bias, *, eps=EPS, row_tile=None,
                      use_fused_small=None):
    """Pallas TPU implementation of MaskedBatchNorm.forward.

    x: (N, C, ...) flattened as (-1, C) with C = x.shape[1] (matches x.size(1)).
    """
    orig_shape = x.shape
    out_dtype = x.dtype
    C = x.shape[1]

    x_flat = x.reshape(-1, C)                    # native dtype on the wire
    m_flat = mask.reshape(-1, C)
    mask_is_bool = (m_flat.dtype == jnp.bool_)
    if mask_is_bool:
        m_flat = m_flat.astype(jnp.int8)         # narrow mask transport
    N = x_flat.shape[0]

    w = weight.reshape(-1).astype(jnp.float32)
    b = bias.reshape(-1).astype(jnp.float32)

    # ------------------ small-input fast path: one fused kernel ------------------
    if use_fused_small is None:
        use_fused_small = _round_up(N, 8) * _round_up(C, 128) <= 256 * 1024
    if use_fused_small:
        out = pl.pallas_call(
            functools.partial(_fused_small_kernel, eps=eps),
            out_shape=jax.ShapeDtypeStruct((N, C), out_dtype),
            grid_spec=pltpu.PrefetchScalarGridSpec(
                num_scalar_prefetch=0,
                grid=(1,),
                in_specs=[pl.BlockSpec((N, C), lambda i: (0, 0)),
                          pl.BlockSpec((N, C), lambda i: (0, 0)),
                          pl.BlockSpec((1, C), lambda i: (0, 0)),
                          pl.BlockSpec((1, C), lambda i: (0, 0))],
                out_specs=pl.BlockSpec((N, C), lambda i: (0, 0)),
            ),
            compiler_params=pltpu.CompilerParams(
                dimension_semantics=("arbitrary",),
                vmem_limit_bytes=32 * 1024 * 1024),
        )(x_flat, m_flat, w.reshape(1, C), b.reshape(1, C))
        return out.reshape(orig_shape)

    # ------------------ lane packing: lane width L multiple of 128 ------------------
    if C % 128 == 0:
        k = 1
    elif C < 128:
        k_lcm = math.lcm(C, 128) // C
        k = k_lcm if k_lcm * C <= 2048 else max(1, 128 // C)
    else:
        k = 1   # C >= 128 and not a multiple of 128: full-C blocks (masked stores)
    L = k * C

    r_raw = -(-N // k)                 # packed row count
    Np = r_raw * k
    pad_rows = Np - N
    if pad_rows:
        # Pad only to a multiple of the packing factor k (< k rows); the ragged
        # last ROW-TILE is handled in-kernel, so no padding to tile multiples.
        # TODO(synk): this still copies x/mask once in HBM when N % k != 0; a
        # divisor-aware k (at the cost of masked lane stores) could avoid it.
        x_flat = jnp.pad(x_flat, ((0, pad_rows), (0, 0)))
        m_flat = jnp.pad(m_flat, ((0, pad_rows), (0, 0)))
    x2 = x_flat.reshape(r_raw, L)
    m2 = m_flat.reshape(r_raw, L)

    x_bytes = x2.dtype.itemsize
    m_bytes = m2.dtype.itemsize
    o_bytes = x_bytes                  # out_dtype == x.dtype

    # ------------------ row-tile selection (~4 MiB f32 per x tile) ------------------
    if row_tile is None:
        target_elems = (4 * 1024 * 1024) // 4
        row_tile = max(32, ((target_elems // L) // 32) * 32)
    if r_raw <= 32:
        tr = r_raw                                   # single full-height tile
    else:
        cap = (r_raw // 32) * 32                     # largest multiple of 32 <= r_raw
        tr = max(32, (min(row_tile, cap) // 32) * 32)  # mult of 32: native int8 tiling
    n_tiles = -(-r_raw // tr)

    # 2-way split of the stats reduction across TensorCores (v7x megacore);
    # harmless (sequential) on single-core chips.
    split = 2 if n_tiles >= 2 else 1
    n_inner = -(-n_tiles // split)
    covered = split * n_inner * tr
    need_row_mask = covered > r_raw

    if split * n_inner > n_tiles:
        # Core 1's last tile is a phantom: clamp its DMA in-bounds; the in-kernel
        # row mask zeroes its contribution.
        def stats_in_map(c, i):
            return (jnp.minimum(c * n_inner + i, n_tiles - 1), 0)
    else:
        def stats_in_map(c, i):
            return (c * n_inner + i, 0)

    n_sums = 3 if mask_is_bool else 5
    blk_elems = tr * L
    vmem1 = max(2 * blk_elems * (x_bytes + m_bytes) + 2 * n_sums * L * 4 + (8 << 20),
                32 << 20)
    vmem2 = max(2 * blk_elems * (x_bytes + m_bytes + o_bytes) + 4 * L * 4 + (8 << 20),
                32 << 20)

    # ------------------ pass 1: masked statistics ------------------
    stats = pl.pallas_call(
        functools.partial(_stats_kernel, r_valid=r_raw, row_tile=tr,
                          bool_mask=mask_is_bool, need_row_mask=need_row_mask),
        out_shape=jax.ShapeDtypeStruct((split, n_sums, L), jnp.float32),
        grid_spec=pltpu.PrefetchScalarGridSpec(
            num_scalar_prefetch=0,
            grid=(split, n_inner),
            in_specs=[pl.BlockSpec((tr, L), stats_in_map),
                      pl.BlockSpec((tr, L), stats_in_map)],
            out_specs=pl.BlockSpec((1, n_sums, L), lambda c, i: (c, 0, 0)),
        ),
        compiler_params=pltpu.CompilerParams(
            dimension_semantics=("parallel", "arbitrary"),
            vmem_limit_bytes=int(vmem1)),
        cost_estimate=pl.CostEstimate(
            flops=(6 if mask_is_bool else 10) * r_raw * L,
            transcendentals=0,
            bytes_accessed=r_raw * L * (x_bytes + m_bytes) + split * n_sums * L * 4),
    )(x2, m2)

    # ------------------ tiny JAX glue ------------------
    s = stats.sum(axis=0)                            # fold per-core partials -> (n_sums, L)

    def fold(v):                                      # lane groups -> per-channel (C,)
        return v.reshape(k, C).sum(axis=0) if k > 1 else v

    S0 = fold(s[0])
    S1 = fold(s[1])
    mean = S1 / S0           # NaN for all-zero-mask channels (matches PyTorch)
    if mask_is_bool:
        S4 = fold(s[2])
        var = S4 / S0 - mean * mean                  # m**2 == m for 0/1 masks
    else:
        S2, S3, S4 = fold(s[2]), fold(s[3]), fold(s[4])
        var = (S4 - 2.0 * mean * S3 + mean * mean * S2) / S0   # Σ(m(x-mean))²/Σm
    istd = jax.lax.rsqrt(var + eps)

    scale_c = w * istd                               # folded affine: xn = scale*x + shift
    shift_c = b - mean * scale_c

    def lane(v):                                     # per-channel (C,) -> lane-packed (L,)
        return jnp.tile(v, k) if k > 1 else v

    params = jnp.stack([lane(scale_c), lane(shift_c)], axis=0).astype(jnp.float32)

    # ------------------ pass 2: apply normalization ------------------
    out2 = pl.pallas_call(
        _apply_kernel,
        out_shape=jax.ShapeDtypeStruct((r_raw, L), out_dtype),
        grid_spec=pltpu.PrefetchScalarGridSpec(
            num_scalar_prefetch=0,
            grid=(n_tiles,),
            in_specs=[pl.BlockSpec((tr, L), lambda i: (i, 0)),
                      pl.BlockSpec((tr, L), lambda i: (i, 0)),
                      pl.BlockSpec((2, L), lambda i: (0, 0))],
            out_specs=pl.BlockSpec((tr, L), lambda i: (i, 0)),
        ),
        compiler_params=pltpu.CompilerParams(
            dimension_semantics=("parallel",),       # sharded across v7x's 2 TCs
            vmem_limit_bytes=int(vmem2)),
        cost_estimate=pl.CostEstimate(
            flops=5 * r_raw * L,
            transcendentals=0,
            bytes_accessed=r_raw * L * (2 * x_bytes + m_bytes) + 2 * L * 4),
    )(x2, m2, params)

    out = out2.reshape(Np, C)
    if pad_rows:
        out = out[:N]
    return out.reshape(orig_shape)


# --------------------------------------------------------------------------- #
# Pure-JAX reference (mirrors the PyTorch forward exactly)
# --------------------------------------------------------------------------- #
def _reference(x, mask, weight, bias, eps=EPS):
    C = x.shape[1]
    m = mask.reshape(-1, C).astype(jnp.float32)
    xf = x.reshape(-1, C).astype(jnp.float32)
    msum = m.sum(0)
    mean = (xf * m).sum(0) / msum
    var = (((xf - mean) * m) ** 2).sum(0) / msum
    xn = (xf - mean) / jnp.sqrt(var + eps)
    xn = weight * xn + bias
    out = xn * m + xf * (1.0 - m)
    return out.reshape(x.shape)


if __name__ == "__main__":
    keys = jax.random.split(jax.random.PRNGKey(0), 12)

    # Case A: small GNN-sized input -> fused single-kernel fast path.
    N, C = 200, 32
    x = jax.random.normal(keys[0], (N, C), dtype=jnp.float32)
    mask = jax.random.uniform(keys[1], (N, C)) > 0.3
    mask = mask.at[0, :].set(True)               # >= 1 valid entry per channel
    w = 1.0 + 0.1 * jax.random.normal(keys[2], (C,), dtype=jnp.float32)
    b = 0.1 * jax.random.normal(keys[3], (C,), dtype=jnp.float32)
    out_a = jax.block_until_ready(masked_batch_norm(x, mask, w, b))
    ref_a = _reference(x, mask, w, b)
    assert out_a.shape == x.shape and out_a.dtype == x.dtype
    assert jnp.allclose(out_a, ref_a, atol=1e-4, rtol=1e-4), "case A mismatch"

    # Case B: tiled two-pass path (bool mask -> 3-moment stats, lane packing k=8,
    # 2-way core-split stats grid, ragged last tile + phantom-tile clamp).
    N, C = 720, 48
    xb = jax.random.normal(keys[4], (N, C), dtype=jnp.float32)
    mb = jax.random.uniform(keys[5], (N, C)) > 0.4
    mb = mb.at[0, :].set(True)
    wb = 1.0 + 0.1 * jax.random.normal(keys[6], (C,), dtype=jnp.float32)
    bb = 0.1 * jax.random.normal(keys[7], (C,), dtype=jnp.float32)
    out_b = jax.block_until_ready(
        masked_batch_norm(xb, mb, wb, bb, row_tile=32, use_fused_small=False))
    ref_b = _reference(xb, mb, wb, bb)
    assert out_b.shape == xb.shape and out_b.dtype == xb.dtype
    assert jnp.allclose(out_b, ref_b, atol=1e-4, rtol=1e-4), "case B mismatch"

    # Case C: float-valued mask (general 5-moment path) and N not a multiple of
    # the packing factor (minimal k-row pad) on the tiled path.
    N, C = 101, 20
    xc = jax.random.normal(keys[8], (N, C), dtype=jnp.float32)
    mc = (jax.random.uniform(keys[9], (N, C)) > 0.3).astype(jnp.float32)
    mc = mc * (0.5 + jax.random.uniform(keys[10], (N, C)))   # non-0/1 mask values
    mc = mc.at[0, :].set(1.0)
    wc = 1.0 + 0.1 * jax.random.normal(keys[11], (C,), dtype=jnp.float32)
    bc = jnp.zeros((C,), dtype=jnp.float32)
    out_c = jax.block_until_ready(
        masked_batch_norm(xc, mc, wc, bc, use_fused_small=False))
    ref_c = _reference(xc, mc, wc, bc)
    assert out_c.shape == xc.shape and out_c.dtype == xc.dtype
    assert jnp.allclose(out_c, ref_c, atol=1e-4, rtol=1e-4), "case C mismatch"

    print("KERNEL_OK")
</pallas_src>

<mosaic_0001>
module attributes {stable_mosaic.version = 11 : i64} {
  func.func @_fused_small_kernel(%arg0: i32, %arg1: memref<200x32xf32, #tpu.memory_space<vmem>>, %arg2: memref<200x32xi8, #tpu.memory_space<vmem>>, %arg3: memref<1x32xf32, #tpu.memory_space<vmem>>, %arg4: memref<1x32xf32, #tpu.memory_space<vmem>>, %arg5: memref<200x32xf32, #tpu.memory_space<vmem>>) attributes {dimension_semantics = [#tpu.dimension_semantics<arbitrary>], iteration_bounds = array<i64: 1>, scalar_prefetch = 0 : i64, scratch_operands = 0 : i64, tpu.core_type = #tpu.core_type<tc>, window_params = [{pipeline_mode = #tpu.pipeline_mode<synchronous>, transform_indices = @transform_0, window_bounds = array<i64: 200, 32>}, {pipeline_mode = #tpu.pipeline_mode<synchronous>, transform_indices = @transform_1, window_bounds = array<i64: 200, 32>}, {pipeline_mode = #tpu.pipeline_mode<synchronous>, transform_indices = @transform_2, window_bounds = array<i64: 1, 32>}, {pipeline_mode = #tpu.pipeline_mode<synchronous>, transform_indices = @transform_3, window_bounds = array<i64: 1, 32>}, {pipeline_mode = #tpu.pipeline_mode<synchronous>, transform_indices = @transform_4, window_bounds = array<i64: 200, 32>}]} {
    %c0 = arith.constant 0 : index
    %c0_0 = arith.constant 0 : index
    %0 = vector.load %arg1[%c0, %c0_0] : memref<200x32xf32, #tpu.memory_space<vmem>>, vector<200x32xf32>
    %c0_1 = arith.constant 0 : index
    %c0_2 = arith.constant 0 : index
    %1 = vector.load %arg2[%c0_1, %c0_2] : memref<200x32xi8, #tpu.memory_space<vmem>>, vector<200x32xi8>
    %2 = arith.sitofp %1 : vector<200x32xi8> to vector<200x32xf32>
    %cst = arith.constant dense<0.000000e+00> : vector<32xf32>
    %3 = vector.multi_reduction <add>, %2, %cst [0] : vector<200x32xf32> to vector<32xf32>
    %4 = vector.shape_cast %3 : vector<32xf32> to vector<1x32xf32>
    %5 = arith.mulf %2, %0 : vector<200x32xf32>
    %cst_3 = arith.constant dense<0.000000e+00> : vector<32xf32>
    %6 = vector.multi_reduction <add>, %5, %cst_3 [0] : vector<200x32xf32> to vector<32xf32>
    %7 = vector.shape_cast %6 : vector<32xf32> to vector<1x32xf32>
    %8 = arith.divf %7, %4 : vector<1x32xf32>
    %9 = vector.broadcast %8 : vector<1x32xf32> to vector<200x32xf32>
    %10 = arith.subf %0, %9 : vector<200x32xf32>
    %11 = arith.mulf %10, %2 : vector<200x32xf32>
    %12 = arith.mulf %11, %11 : vector<200x32xf32>
    %cst_4 = arith.constant dense<0.000000e+00> : vector<32xf32>
    %13 = vector.multi_reduction <add>, %12, %cst_4 [0] : vector<200x32xf32> to vector<32xf32>
    %14 = vector.shape_cast %13 : vector<32xf32> to vector<1x32xf32>
    %15 = arith.divf %14, %4 : vector<1x32xf32>
    %cst_5 = arith.constant 9.99999974E-6 : f32
    %16 = vector.broadcast %cst_5 : f32 to vector<1x32xf32>
    %17 = arith.addf %15, %16 : vector<1x32xf32>
    %18 = math.rsqrt %17 : vector<1x32xf32>
    %c0_6 = arith.constant 0 : index
    %c0_7 = arith.constant 0 : index
    %19 = vector.load %arg3[%c0_6, %c0_7] : memref<1x32xf32, #tpu.memory_space<vmem>>, vector<1x32xf32>
    %20 = vector.broadcast %8 : vector<1x32xf32> to vector<200x32xf32>
    %21 = arith.subf %0, %20 : vector<200x32xf32>
    %22 = vector.broadcast %18 : vector<1x32xf32> to vector<200x32xf32>
    %23 = arith.mulf %21, %22 : vector<200x32xf32>
    %24 = vector.broadcast %19 : vector<1x32xf32> to vector<200x32xf32>
    %25 = arith.mulf %24, %23 : vector<200x32xf32>
    %c0_8 = arith.constant 0 : index
    %c0_9 = arith.constant 0 : index
    %26 = vector.load %arg4[%c0_8, %c0_9] : memref<1x32xf32, #tpu.memory_space<vmem>>, vector<1x32xf32>
    %27 = vector.broadcast %26 : vector<1x32xf32> to vector<200x32xf32>
    %28 = arith.addf %25, %27 : vector<200x32xf32>
    %29 = arith.subf %28, %0 : vector<200x32xf32>
    %30 = arith.mulf %2, %29 : vector<200x32xf32>
    %31 = arith.addf %0, %30 : vector<200x32xf32>
    %c0_10 = arith.constant 0 : index
    %c0_11 = arith.constant 0 : index
    %32 = vector.load %arg5[%c0_10, %c0_11] : memref<200x32xf32, #tpu.memory_space<vmem>>, vector<200x32xf32>
    tpu.vector_store %arg5[%c0_10, %c0_11], %31 {strides = array<i32>} : memref<200x32xf32, #tpu.memory_space<vmem>>, vector<200x32xf32>,
    return
  }
  func.func @transform_0(%arg0: i32) -> (i32, i32) {
    %c0_i32 = arith.constant 0 : i32
    %c0_i32_0 = arith.constant 0 : i32
    %c0_i32_1 = arith.constant 0 : i32
    return %c0_i32, %c0_i32_0 : i32, i32
  }
  func.func @transform_1(%arg0: i32) -> (i32, i32) {
    %c0_i32 = arith.constant 0 : i32
    %c0_i32_0 = arith.constant 0 : i32
    %c0_i32_1 = arith.constant 0 : i32
    return %c0_i32, %c0_i32_0 : i32, i32
  }
  func.func @transform_2(%arg0: i32) -> (i32, i32) {
    %c0_i32 = arith.constant 0 : i32
    %c0_i32_0 = arith.constant 0 : i32
    %c0_i32_1 = arith.constant 0 : i32
    return %c0_i32, %c0_i32_0 : i32, i32
  }
  func.func @transform_3(%arg0: i32) -> (i32, i32) {
    %c0_i32 = arith.constant 0 : i32
    %c0_i32_0 = arith.constant 0 : i32
    %c0_i32_1 = arith.constant 0 : i32
    return %c0_i32, %c0_i32_0 : i32, i32
  }
  func.func @transform_4(%arg0: i32) -> (i32, i32) {
    %c0_i32 = arith.constant 0 : i32
    %c0_i32_0 = arith.constant 0 : i32
    %c0_i32_1 = arith.constant 0 : i32
    return %c0_i32, %c0_i32_0 : i32, i32
  }
}

</mosaic_0001>

<bundles_post_ra>
// kernel: tpu_custom_call.1
= control target key start
LH: loop header
LB: loop body
LE: loop exit
PB: predicated region body
PF: predicated region fallthrough
CT: control target
= control target key end

     0   :  { %vm117_vm0 = vcmask 261120   ;;  %s1460_s1 = inlined_call_operand.vmem [shape: s8[200,32], index: 1, kind: input, shape index: {}]   ;;  %s1461_s0 = inlined_call_operand.vmem [shape: f32[200,32], index: 0, kind: input, shape index: {}]   ;;  %s1462_s2 = inlined_call_operand.vmem [shape: f32[1,32], index: 2, kind: input, shape index: {}]   ;;  %s1463_s3 = inlined_call_operand.vmem [shape: f32[1,32], index: 3, kind: input, shape index: {}]   ;;  %s1464_s4 = inlined_call_operand.vmem [shape: f32[200,32], index: 4, kind: output, shape index: {}]  }
   0x1   :  { %v584_v0 = vld [vmem:[%s1460_s1] sm:$0xff]   ;;  %v632_v4 = vld [vmem:[%s1460_s1 + $0x8] sm:$0xff]   ;;  %v634_v16 = vld [vmem:[%s1460_s1 + $0x10] sm:$0xff]  }
   0x2   :  { %v585_v1 = vunpack.c.0.s8 %v584_v0  ;;  %v586_v2 = vunpack.c.1.s8 %v584_v0  ;;  %v589_v3 = vunpack.c.2.s8 %v584_v0  ;;  %v590_v5 = vunpack.c.3.s8 %v584_v0  ;;  %v711_v30 = vld [vmem:[%s1461_s0] sm:$0xff]  ;;  %v716_v32 = vld [vmem:[%s1461_s0 + $0x8] sm:$0xff]  ;;  %v721_v33 = vld [vmem:[%s1461_s0 + $0x10] sm:$0xff] }
   0x3   :  { %v593_v6 = vunpack.c.0.s8 %v632_v4  ;;  %v594_v10 = vunpack.c.1.s8 %v632_v4  ;;  %v597_v12 = vunpack.c.2.s8 %v632_v4  ;;  %v598_v19 = vunpack.c.3.s8 %v632_v4  ;;  %v636_v37 = vld [vmem:[%s1460_s1 + $0x18] sm:$0xff]   ;;  %v748_v47 = vld [vmem:[%s1461_s0 + $0x20] sm:$0xff]  ;;  %v759_v53 = vld [vmem:[%s1461_s0 + $0x28] sm:$0xff] }
   0x4   :  { %v677_v7 = vcvt.s32.f32 %v585_v1  ;;  %v679_v8 = vcvt.s32.f32 %v586_v2  ;;  %v681_v9 = vcvt.s32.f32 %v589_v3  ;;  %v683_v11 = vcvt.s32.f32 %v590_v5  ;;  %v733_v39 = vld [vmem:[%s1461_s0 + $0x18] sm:$0xff]  ;;  %v773_v62 = vld [vmem:[%s1461_s0 + $0x30] sm:$0xff]  ;;  %v638_v3 = vld [vmem:[%s1460_s1 + $0x20] sm:$0xff]  }
   0x5   :  { %v685_v13 = vcvt.s32.f32 %v593_v6  ;;  %v696_v20 = vcvt.s32.f32 %v594_v10  ;;  %v601_v23 = vunpack.c.0.s8 %v634_v16  ;;  %v700_v24 = vcvt.s32.f32 %v597_v12  ;;  %v788_v10 = vld [vmem:[%s1461_s0 + $0x38] sm:$0xff] }
   0x6   :  { %1516 = vst [vmem:[#allocation2_spill] sm:$0xff] %v681_v9  ;;  %1517 = vst [vmem:[#allocation3_spill] sm:$0xff] %v683_v11  ;;  %v118_v14 = vsel %vm117_vm0, %v677_v7, 0.0  ;;  %v119_v15 = vsel %vm117_vm0, %v679_v8, 0.0  ;;  %v121_v18 = vsel %vm117_vm0, %v681_v9, 0.0  ;;  %v123_v21 = vsel %vm117_vm0, %v683_v11, 0.0 }
   0x7   :  { %1518 = vst [vmem:[#allocation4_spill] sm:$0xff] %v685_v13  ;;  %v120_v17 = vadd.f32 %v119_v15, %v118_v14  ;;  %1519 = vst [vmem:[#allocation5_spill] sm:$0xff] %v696_v20  ;;  %v125_v25 = vsel %vm117_vm0, %v685_v13, 0.0  ;;  %v602_v27 = vunpack.c.1.s8 %v634_v16  ;;  %v704_v28 = vcvt.s32.f32 %v598_v19 }
   0x8   :  { %1520 = vst [vmem:[#allocation6_spill] sm:$0xff] %v700_v24  ;;  %v127_v29 = vsel %vm117_vm0, %v696_v20, 0.0  ;;  %v605_v34 = vunpack.c.2.s8 %v634_v16  ;;  %v723_v35 = vcvt.s32.f32 %v601_v23  ;;  %v129_v36 = vsel %vm117_vm0, %v700_v24, 0.0 }
   0x9   :  { %v122_v22 = vadd.f32 %v121_v18, %v120_v17  ;;  %v606_v40 = vunpack.c.3.s8 %v634_v16  ;;  %v735_v41 = vcvt.s32.f32 %v602_v27  ;;  %v131_v42 = vsel %vm117_vm0, %v704_v28, 0.0 }
   0xa   :  { %1521 = vst [vmem:[#allocation7_spill] sm:$0xff] %v723_v35  ;;  %v173_v43 = vmul.f32 %v677_v7, %v711_v30  ;;  %v174_v45 = vmul.f32 %v679_v8, %v716_v32  ;;  %v175_v46 = vmul.f32 %v681_v9, %v721_v33  ;;  %v609_v48 = vunpack.c.0.s8 %v636_v37 }
   0xb   :  { %v124_v26 = vadd.f32 %v123_v21, %v122_v22  ;;  %1522 = vst [vmem:[#allocation8_spill] sm:$0xff] %v735_v41  ;;  %v750_v49 = vcvt.s32.f32 %v605_v34  ;;  %v133_v50 = vsel %vm117_vm0, %v723_v35, 0.0  ;;  %v176_v52 = vmul.f32 %v683_v11, %v733_v39  ;;  %v800_v21 = vld [vmem:[%s1461_s0 + $0x40] sm:$0xff]  ;;  %v812_v34 = vld [vmem:[%s1461_s0 + $0x48] sm:$0xff] }
   0xc   :  { %v610_v54 = vunpack.c.1.s8 %v636_v37  ;;  %v761_v55 = vcvt.s32.f32 %v606_v40  ;;  %v135_v56 = vsel %vm117_vm0, %v735_v41, 0.0  ;;  %v198_v57 = vsel %vm117_vm0, %v173_v43, 0.0  ;;  %1526 = vst [vmem:[#allocation12_spill] sm:$0xff] %v800_v21 }
   0xd   :  { %v126_v31 = vadd.f32 %v125_v25, %v124_v26  ;;  %1523 = vst [vmem:[#allocation9_spill] sm:$0xff] %v750_v49  ;;  %v177_v59 = vmul.f32 %v685_v13, %v748_v47  ;;  %v199_v60 = vsel %vm117_vm0, %v174_v45, 0.0  ;;  %v201_v61 = vsel %vm117_vm0, %v175_v46, 0.0  ;;  %v824_v45 = vld [vmem:[%s1461_s0 + $0x50] sm:$0xff] }
   0xe   :  { %1524 = vst [vmem:[#allocation10_spill] sm:$0xff] %v761_v55  ;;  %v613_v63 = vunpack.c.2.s8 %v636_v37  ;;  %v775_v0 = vcvt.s32.f32 %v609_v48  ;;  %v137_v1 = vsel %vm117_vm0, %v750_v49, 0.0  ;;  %v200_v2 = vadd.f32 %v199_v60, %v198_v57  ;;  %1527 = vst [vmem:[#allocation13_spill] sm:$0xff] %v824_v45 }
   0xf   :  { %v128_v38 = vadd.f32 %v127_v29, %v126_v31  ;;  %v178_v5 = vmul.f32 %v696_v20, %v759_v53  ;;  %v203_v6 = vsel %vm117_vm0, %v176_v52, 0.0  ;;  %v614_v12 = vunpack.c.3.s8 %v636_v37  ;;  %v640_v52 = vld [vmem:[%s1460_s1 + $0x28] sm:$0xff]  }
  0x10   :  { %1525 = vst [vmem:[#allocation11_spill] sm:$0xff] %v775_v0  ;;  %v790_v14 = vcvt.s32.f32 %v610_v54  ;;  %v139_v15 = vsel %vm117_vm0, %v761_v55, 0.0  ;;  %v202_v16 = vadd.f32 %v201_v61, %v200_v2  ;;  %v179_v18 = vmul.f32 %v700_v24, %v773_v62 }
  0x11   :  { %v130_v44 = vadd.f32 %v129_v36, %v128_v38  ;;  %v205_v19 = vsel %vm117_vm0, %v177_v59, 0.0  ;;  %v617_v22 = vunpack.c.0.s8 %v638_v3  ;;  %v802_v23 = vcvt.s32.f32 %v613_v63 }
  0x12   :  { %v141_v25 = vsel %vm117_vm0, %v775_v0, 0.0  ;;  %v204_v26 = vadd.f32 %v203_v6, %v202_v16  ;;  %v180_v29 = vmul.f32 %v704_v28, %v788_v10  ;;  %v207_v31 = vsel %vm117_vm0, %v178_v5, 0.0  ;;  %v851_v5 = vld [vmem:[%s1461_s0 + $0x60] sm:$0xff] }
  0x13   :  { %v132_v51 = vadd.f32 %v131_v42, %v130_v44  ;;  %v618_v36 = vunpack.c.1.s8 %v638_v3  ;;  %v814_v37 = vcvt.s32.f32 %v614_v12  ;;  %v143_v38 = vsel %vm117_vm0, %v790_v14, 0.0 }
  0x14   :  { %v206_v40 = vadd.f32 %v205_v19, %v204_v26  ;;  %v181_v43 = vmul.f32 %v723_v35, %v800_v21  ;;  %v209_v44 = vsel %vm117_vm0, %v179_v18, 0.0  ;;  %v621_v46 = vunpack.c.2.s8 %v638_v3  ;;  %v863_v19 = vld [vmem:[%s1461_s0 + $0x68] sm:$0xff] }
  0x15   :  { %v134_v58 = vadd.f32 %v133_v50, %v132_v51  ;;  %v826_v48 = vcvt.s32.f32 %v617_v22  ;;  %v145_v50 = vsel %vm117_vm0, %v802_v23, 0.0  ;;  %v211_v57 = vsel %vm117_vm0, %v180_v29, 0.0 }
  0x16   :  { %v208_v51 = vadd.f32 %v207_v31, %v206_v40  ;;  %v622_v59 = vunpack.c.3.s8 %v638_v3  ;;  %v841_v60 = vcvt.s32.f32 %v618_v36  ;;  %v147_v61 = vsel %vm117_vm0, %v814_v37, 0.0 }
  0x17   :  { %v136_v4 = vadd.f32 %v135_v56, %v134_v58  ;;  %1528 = vst [vmem:[#allocation14_spill] sm:$0xff] %v826_v48  ;;  %v182_v56 = vmul.f32 %v735_v41, %v812_v34  ;;  %v839_v58 = vld [vmem:[%s1461_s0 + $0x58] sm:$0xff]  ;;  %v183_v2 = vmul.f32 %v750_v49, %v824_v45  ;;  %v625_v6 = vunpack.c.0.s8 %v640_v52 }
  0x18   :  { %1529 = vst [vmem:[#allocation15_spill] sm:$0xff] %v841_v60  ;;  %v210_v63 = vadd.f32 %v209_v44, %v208_v51  ;;  %v853_v12 = vcvt.s32.f32 %v621_v46  ;;  %v149_v3 = vsel %vm117_vm0, %v826_v48, 0.0  ;;  %v626_v22 = vunpack.c.1.s8 %v640_v52  ;;  %v66_v46 = vld [vmem:[%s1460_s1 + $0x30] sm:$0x3] }
  0x19   :  { %v138_v17 = vadd.f32 %v137_v1, %v136_v4  ;;  %v213_v4 = vsel %vm117_vm0, %v181_v43, 0.0  ;;  %v215_v18 = vsel %vm117_vm0, %v182_v56, 0.0  ;;  %v151_v26 = vsel %vm117_vm0, %v841_v60, 0.0  ;;  %v890_v56 = vld [vmem:[%s1461_s0 + $0x78] sm:$0xff] }
  0x1a   :  { %1530 = vst [vmem:[#allocation16_spill] sm:$0xff] %v853_v12  ;;  %v185_v31 = vmul.f32 %v775_v0, %v851_v5  ;;  %v217_v36 = vsel %vm117_vm0, %v183_v2, 0.0  ;;  %v629_v40 = vunpack.c.2.s8 %v640_v52  ;;  %v153_v43 = vsel %vm117_vm0, %v853_v12, 0.0 }
  0x1b   :  { %v140_v27 = vadd.f32 %v139_v15, %v138_v17  ;;  %v212_v15 = vadd.f32 %v211_v57, %v210_v63  ;;  %v184_v17 = vmul.f32 %v761_v55, %v839_v58  ;;  %v186_v51 = vmul.f32 %v790_v14, %v863_v19 }
  0x1c   :  { %v630_v57 = vunpack.c.3.s8 %v640_v52 }
  0x1d   :  { %v142_v42 = vadd.f32 %v141_v25, %v140_v27  ;;  %v865_v25 = vcvt.s32.f32 %v622_v59  ;;  %v214_v27 = vadd.f32 %v213_v4, %v212_v15  ;;  %v892_v59 = vcvt.s32.f32 %v626_v22 }
  0x1e   :  { %v221_v4 = vsel %vm117_vm0, %v185_v31, 0.0  ;;  %v904_v15 = vcvt.s32.f32 %v629_v40  ;;  %v223_v22 = vsel %vm117_vm0, %v186_v51, 0.0 }
  0x1f   :  { %v144_v54 = vadd.f32 %v143_v38, %v142_v42  ;;  %1531 = vst [vmem:[#allocation17_spill] sm:$0xff] %v865_v25  ;;  %v875_v38 = vld [vmem:[%s1461_s0 + $0x70] sm:$0xff]  ;;  %v877_v42 = vcvt.s32.f32 %v625_v6  ;;  %v216_v44 = vadd.f32 %v215_v18, %v214_v27  ;;  %1533 = vst [vmem:[#allocation19_spill] sm:$0xff] %v892_v59  ;;  %v902_v6 = vld [vmem:[%s1461_s0 + $0x80] sm:$0xff]  ;;  %v188_v18 = vmul.f32 %v814_v37, %v890_v56 }
  0x20   :  { %v187_v2 = vmul.f32 %v802_v23, %v875_v38  ;;  %1534 = vst [vmem:[#allocation20_spill] sm:$0xff] %v902_v6  ;;  %1535 = vst [vmem:[#allocation21_spill] sm:$0xff] %v904_v15  ;;  %v916_v27 = vcvt.s32.f32 %v630_v57  ;;  %v189_v40 = vmul.f32 %v826_v48, %v902_v6 }
  0x21   :  { %v146_v1 = vadd.f32 %v145_v50, %v144_v54  ;;  %1532 = vst [vmem:[#allocation18_spill] sm:$0xff] %v877_v42  ;;  %v219_v54 = vsel %vm117_vm0, %v184_v17, 0.0  ;;  %v218_v63 = vadd.f32 %v217_v36, %v216_v44  ;;  %v157_v52 = vsel %vm117_vm0, %v877_v42, 0.0  ;;  %v926_v44 = vld [vmem:[%s1461_s0 + $0x90] sm:$0xff] }
  0x22   :  { %1537 = vst [vmem:[#allocation23_spill] sm:$0xff] %v916_v27  ;;  %1538 = vst [vmem:[#allocation24_spill] sm:$0xff] %v926_v44 }
  0x23   :  { %v148_v16 = vadd.f32 %v147_v61, %v146_v1  ;;  %v155_v61 = vsel %vm117_vm0, %v865_v25, 0.0 }
  0x25   :  { %v150_v29 = vadd.f32 %v149_v3, %v148_v16  ;;  %v91_v3 = vunpack.c.0.s8 %v66_v46  ;;  %v220_v16 = vadd.f32 %v219_v54, %v218_v63  ;;  %v938_v63 = vld [vmem:[%s1461_s0 + $0x98] sm:$0xff] }
  0x26   :  { %1540 = vst [vmem:[#allocation26_spill] sm:$0xff] %v938_v63 }
  0x27   :  { %v152_v50 = vadd.f32 %v151_v26, %v150_v29  ;;  %v914_v26 = vld [vmem:[%s1461_s0 + $0x88] sm:$0xff]  ;;  %v159_v29 = vsel %vm117_vm0, %v892_v59, 0.0  ;;  %v222_v31 = vadd.f32 %v221_v4, %v220_v16  ;;  %v928_v46 = vcvt.s32.f32 %v91_v3  ;;  %v948_v16 = vld [vmem:[%s1461_s0 + $0xa0] sm:$0xff] }
  0x28   :  { %1536 = vst [vmem:[#allocation22_spill] sm:$0xff] %v914_v26  ;;  %v190_v57 = vmul.f32 %v841_v60, %v914_v26  ;;  %v191_v3 = vmul.f32 %v853_v12, %v926_v44  ;;  %1541 = vst [vmem:[#allocation27_spill] sm:$0xff] %v948_v16 }
  0x29   :  { %v154_v1 = vadd.f32 %v153_v43, %v152_v50  ;;  %v225_v43 = vsel %vm117_vm0, %v187_v2, 0.0  ;;  %1539 = vst [vmem:[#allocation25_spill] sm:$0xff] %v928_v46  ;;  %v161_v50 = vsel %vm117_vm0, %v904_v15, 0.0  ;;  %v224_v51 = vadd.f32 %v223_v22, %v222_v31 }
  0x2a   :  { %v231_v31 = vsel %vm117_vm0, %v190_v57, 0.0 }
  0x2b   :  { %v156_v17 = vadd.f32 %v155_v61, %v154_v1  ;;  %v227_v61 = vsel %vm117_vm0, %v188_v18, 0.0  ;;  %v163_v1 = vsel %vm117_vm0, %v916_v27, 0.0  ;;  %v226_v2 = vadd.f32 %v225_v43, %v224_v51 }
  0x2c   :  { %v233_v51 = vsel %vm117_vm0, %v191_v3, 0.0 }
  0x2d   :  { %v158_v36 = vadd.f32 %v157_v52, %v156_v17  ;;  %v229_v52 = vsel %vm117_vm0, %v189_v40, 0.0  ;;  %v165_v17 = vsel %vm117_vm0, %v928_v46, 0.0  ;;  %v228_v18 = vadd.f32 %v227_v61, %v226_v2 }
  0x2f   :  { %v160_v54 = vadd.f32 %v159_v29, %v158_v36  ;;  %v192_v29 = vmul.f32 %v865_v25, %v938_v63  ;;  %v958_v36 = vld [vmem:[%s1461_s0 + $0xa8] sm:$0xff]  ;;  %v230_v40 = vadd.f32 %v229_v52, %v228_v18 }
  0x30   :  { %1542 = vst [vmem:[#allocation28_spill] sm:$0xff] %v958_v36  ;;  %v194_v57 = vmul.f32 %v892_v59, %v958_v36 }
  0x31   :  { %v162_v4 = vadd.f32 %v161_v50, %v160_v54  ;;  %v193_v50 = vmul.f32 %v877_v42, %v948_v16  ;;  %v966_v54 = vld [vmem:[%s1461_s0 + $0xb0] sm:$0xff]  ;;  %v232_v61 = vadd.f32 %v231_v31, %v230_v40  ;;  %v235_v2 = vsel %vm117_vm0, %v192_v29, 0.0 }
  0x32   :  { %1543 = vst [vmem:[#allocation29_spill] sm:$0xff] %v966_v54  ;;  %v195_v3 = vmul.f32 %v904_v15, %v966_v54  ;;  %v239_v59 = vsel %vm117_vm0, %v194_v57, 0.0 }
  0x33   :  { %v164_v22 = vadd.f32 %v163_v1, %v162_v4  ;;  %v974_v4 = vld [vmem:[%s1461_s0 + $0xb8] sm:$0xff]  ;;  %v234_v52 = vadd.f32 %v233_v51, %v232_v61  ;;  %v237_v18 = vsel %vm117_vm0, %v193_v50, 0.0 }
  0x34   :  { %1544 = vst [vmem:[#allocation30_spill] sm:$0xff] %v974_v4  ;;  %v196_v29 = vmul.f32 %v916_v27, %v974_v4  ;;  %v241_v61 = vsel %vm117_vm0, %v195_v3, 0.0 }
  0x35   :  { %v166_v43 = vadd.f32 %v165_v17, %v164_v22  ;;  %v982_v22 = vld [vmem:[%s1461_s0 + $0xc0] sm:$0xff]  ;;  %v236_v31 = vadd.f32 %v235_v2, %v234_v52 }
  0x36   :  { %1545 = vst [vmem:[#allocation31_spill] sm:$0xff] %v982_v22 }
  0x37   :  { %v167_v1 = vrot.slane %v166_v43, 4  ;;  %v238_v42 = vadd.f32 %v237_v18, %v236_v31 }
  0x39   :  { %v168_v17 = vadd.f32 %v167_v1, %v166_v43  ;;  %v197_v43 = vmul.f32 %v928_v46, %v982_v22  ;;  %v240_v50 = vadd.f32 %v239_v59, %v238_v42  ;;  %v243_v1 = vsel %vm117_vm0, %v196_v29, 0.0 }
  0x3b   :  { %v169_v40 = vrot.slane %v168_v17, 2  ;;  %v242_v15 = vadd.f32 %v241_v61, %v240_v50  ;;  %v245_v2 = vsel %vm117_vm0, %v197_v43, 0.0 }
  0x3d   :  { %v170_v51 = vadd.f32 %v169_v40, %v168_v17  ;;  %v244_v52 = vadd.f32 %v243_v1, %v242_v15 }
  0x3f   :  { %v171_v54 = vrot.slane %v170_v51, 1  ;;  %v246_v25 = vadd.f32 %v245_v2, %v244_v52 }
  0x41   :  { %v172_v36 = vadd.f32 %v171_v54, %v170_v51  ;;  %v247_v27 = vrot.slane %v246_v25, 4 }
  0x43   :  { %v248_v4 = vadd.f32 %v247_v27, %v246_v25  ;;  %642 = vrcp.f32 %v172_v36 }
  0x45   :  { %v249_v57 = vrot.slane %v248_v4, 2 }
  0x47   :  { %v250_v17 = vadd.f32 %v249_v57, %v248_v4 }
  0x49   :  { %v251_v18 = vrot.slane %v250_v17, 1 }
  0x4b   :  { %v252_v31 = vadd.f32 %v251_v18, %v250_v17 }
  0x4d   :  { %v992_v40 = vpop.eup %642 }
  0x4e   :  { %v995_v42 = vmul.f32 %v992_v40, %v252_v31 }
  0x50   :  { %v999_v59 = vsub.f32 %v711_v30, %v995_v42  ;;  %v1003_v15 = vsub.f32 %v716_v32, %v995_v42  ;;  %v1007_v25 = vsub.f32 %v721_v33, %v995_v42  ;;  %v1011_v27 = vsub.f32 %v733_v39, %v995_v42 }
  0x51   :  { %v1017_v54 = vsub.f32 %v748_v47, %v995_v42  ;;  %v1025_v29 = vsub.f32 %v759_v53, %v995_v42  ;;  %v1031_v61 = vsub.f32 %v773_v62, %v995_v42  ;;  %v1037_v52 = vsub.f32 %v788_v10, %v995_v42 }
  0x52   :  { %v280_v36 = vmul.f32 %v999_v59, %v677_v7  ;;  %v281_v4 = vmul.f32 %v1003_v15, %v679_v8  ;;  %v282_v3 = vmul.f32 %v1007_v25, %v681_v9  ;;  %v283_v51 = vmul.f32 %v1011_v27, %v683_v11 }
  0x53   :  { %v284_v50 = vmul.f32 %v1017_v54, %v685_v13  ;;  %v285_v57 = vmul.f32 %v1025_v29, %v696_v20  ;;  %v1043_v18 = vsub.f32 %v800_v21, %v995_v42  ;;  %v1052_v9 = vsub.f32 %v812_v34, %v995_v42 }
  0x54   :  { %v305_v43 = vmul.f32 %v280_v36, %v280_v36  ;;  %v306_v1 = vmul.f32 %v281_v4, %v281_v4  ;;  %v307_v2 = vmul.f32 %v282_v3, %v282_v3  ;;  %v308_v17 = vmul.f32 %v283_v51, %v283_v51 }
  0x55   :  { %v286_v36 = vmul.f32 %v1031_v61, %v700_v24  ;;  %v309_v13 = vmul.f32 %v284_v50, %v284_v50  ;;  %v287_v51 = vmul.f32 %v1037_v52, %v704_v28  ;;  %v310_v21 = vmul.f32 %v285_v57, %v285_v57 }
  0x56   :  { %v330_v31 = vsel %vm117_vm0, %v305_v43, 0.0  ;;  %v331_v4 = vsel %vm117_vm0, %v306_v1, 0.0  ;;  %v333_v3 = vsel %vm117_vm0, %v307_v2, 0.0  ;;  %v335_v20 = vsel %vm117_vm0, %v308_v17, 0.0 }
  0x57   :  { %v332_v11 = vadd.f32 %v331_v4, %v330_v31  ;;  %v1059_v24 = vsub.f32 %v824_v45, %v995_v42  ;;  %v288_v50 = vmul.f32 %v1043_v18, %v723_v35  ;;  %v311_v1 = vmul.f32 %v286_v36, %v286_v36 }
  0x58   :  { %v337_v2 = vsel %vm117_vm0, %v309_v13, 0.0  ;;  %v1066_v4 = vsub.f32 %v839_v58, %v995_v42  ;;  %v289_v57 = vmul.f32 %v1052_v9, %v735_v41  ;;  %v312_v17 = vmul.f32 %v287_v51, %v287_v51 }
  0x59   :  { %v334_v43 = vadd.f32 %v333_v3, %v332_v11  ;;  %v339_v11 = vsel %vm117_vm0, %v310_v21, 0.0  ;;  %v1073_v45 = vsub.f32 %v851_v5, %v995_v42  ;;  %v290_v36 = vmul.f32 %v1059_v24, %v750_v49 }
  0x5a   :  { %v313_v13 = vmul.f32 %v288_v50, %v288_v50  ;;  %v1080_v35 = vsub.f32 %v863_v19, %v995_v42  ;;  %v291_v51 = vmul.f32 %v1066_v4, %v761_v55  ;;  %v314_v21 = vmul.f32 %v289_v57, %v289_v57 }
  0x5b   :  { %v336_v31 = vadd.f32 %v335_v20, %v334_v43  ;;  %v341_v20 = vsel %vm117_vm0, %v311_v1, 0.0  ;;  %v1087_v41 = vsub.f32 %v875_v38, %v995_v42  ;;  %v292_v50 = vmul.f32 %v1073_v45, %v775_v0 }
  0x5c   :  { %v315_v1 = vmul.f32 %v290_v36, %v290_v36  ;;  %v1094_v49 = vsub.f32 %v890_v56, %v995_v42  ;;  %v293_v57 = vmul.f32 %v1080_v35, %v790_v14  ;;  %v1101_v55 = vsub.f32 %v902_v6, %v995_v42 }
  0x5d   :  { %v338_v3 = vadd.f32 %v337_v2, %v336_v31  ;;  %v343_v2 = vsel %vm117_vm0, %v312_v17, 0.0  ;;  %v316_v17 = vmul.f32 %v291_v51, %v291_v51  ;;  %v294_v36 = vmul.f32 %v1087_v41, %v802_v23 }
  0x5e   :  { %v1108_v0 = vsub.f32 %v914_v26, %v995_v42  ;;  %v295_v51 = vmul.f32 %v1094_v49, %v814_v37  ;;  %v1115_v6 = vsub.f32 %v926_v44, %v995_v42  ;;  %v1122_v26 = vsub.f32 %v938_v63, %v995_v42 }
  0x5f   :  { %v340_v43 = vadd.f32 %v339_v11, %v338_v3  ;;  %v345_v11 = vsel %vm117_vm0, %v313_v13, 0.0  ;;  %v317_v13 = vmul.f32 %v292_v50, %v292_v50  ;;  %v296_v50 = vmul.f32 %v1101_v55, %v826_v48  ;;  %v1550_v48 = vld [vmem:[#allocation28_spill] sm:$0xff] }
  0x60   :  { %1546 = vst [vmem:[#allocation32_spill] sm:$0xff] %v1108_v0  ;;  %1547 = vst [vmem:[#allocation33_spill] sm:$0xff] %v1115_v6  ;;  %v1129_v44 = vsub.f32 %v948_v16, %v995_v42  ;;  %v1136_v63 = vsub.f32 %v1550_v48, %v995_v42  ;;  %v1552_v16 = vld [vmem:[#allocation29_spill] sm:$0xff]  ;;  %v1554_v48 = vld [vmem:[#allocation30_spill] sm:$0xff] }
  0x61   :  { %v342_v31 = vadd.f32 %v341_v20, %v340_v43  ;;  %v347_v20 = vsel %vm117_vm0, %v314_v21, 0.0  ;;  %v318_v21 = vmul.f32 %v293_v57, %v293_v57  ;;  %1548 = vst [vmem:[#allocation34_spill] sm:$0xff] %v1122_v26  ;;  %v297_v57 = vmul.f32 %v1108_v0, %v841_v60  ;;  %v1551_v60 = vld [vmem:[#allocation17_spill] sm:$0xff] }
  0x62   :  { %1549 = vst [vmem:[#allocation35_spill] sm:$0xff] %v1129_v44  ;;  %v1143_v0 = vsub.f32 %v1552_v16, %v995_v42  ;;  %v1157_v16 = vsub.f32 %v982_v22, %v995_v42 }
  0x63   :  { %v344_v3 = vadd.f32 %v343_v2, %v342_v31  ;;  %v349_v2 = vsel %vm117_vm0, %v315_v1, 0.0  ;;  %v319_v1 = vmul.f32 %v294_v36, %v294_v36  ;;  %v298_v36 = vmul.f32 %v1115_v6, %v853_v12  ;;  %v1553_v12 = vld [vmem:[#allocation18_spill] sm:$0xff] }
  0x64   :  { %v1150_v6 = vsub.f32 %v1554_v48, %v995_v42  ;;  %1556 = vst [vmem:[#allocation36_spill] sm:$0xff] %v1157_v16  ;;  %v1558_v48 = vld [vmem:[#allocation23_spill] sm:$0xff] }
  0x65   :  { %v346_v43 = vadd.f32 %v345_v11, %v344_v3  ;;  %v351_v11 = vsel %vm117_vm0, %v316_v17, 0.0  ;;  %v320_v17 = vmul.f32 %v295_v51, %v295_v51  ;;  %v299_v51 = vmul.f32 %v1122_v26, %v1551_v60  ;;  %v1555_v60 = vld [vmem:[#allocation19_spill] sm:$0xff] }
  0x67   :  { %v348_v31 = vadd.f32 %v347_v20, %v346_v43  ;;  %v353_v20 = vsel %vm117_vm0, %v317_v13, 0.0  ;;  %v321_v13 = vmul.f32 %v296_v50, %v296_v50  ;;  %v300_v50 = vmul.f32 %v1129_v44, %v1553_v12  ;;  %v1557_v12 = vld [vmem:[#allocation21_spill] sm:$0xff] }
  0x68   :  { %v303_v44 = vmul.f32 %v1150_v6, %v1558_v48 }
  0x69   :  { %v350_v3 = vadd.f32 %v349_v2, %v348_v31  ;;  %v355_v2 = vsel %vm117_vm0, %v318_v21, 0.0  ;;  %v322_v21 = vmul.f32 %v297_v57, %v297_v57  ;;  %v301_v57 = vmul.f32 %v1136_v63, %v1555_v60 }
  0x6a   :  { %v328_v22 = vmul.f32 %v303_v44, %v303_v44 }
  0x6b   :  { %v352_v43 = vadd.f32 %v351_v11, %v350_v3  ;;  %v357_v11 = vsel %vm117_vm0, %v319_v1, 0.0  ;;  %v323_v1 = vmul.f32 %v298_v36, %v298_v36  ;;  %v302_v36 = vmul.f32 %v1143_v0, %v1557_v12 }
  0x6c   :  { %v326_v26 = vmul.f32 %v301_v57, %v301_v57  ;;  %v375_v57 = vsel %vm117_vm0, %v328_v22, 0.0 }
  0x6d   :  { %v354_v31 = vadd.f32 %v353_v20, %v352_v43  ;;  %v359_v20 = vsel %vm117_vm0, %v320_v17, 0.0  ;;  %v324_v17 = vmul.f32 %v299_v51, %v299_v51 }
  0x6f   :  { %v356_v3 = vadd.f32 %v355_v2, %v354_v31  ;;  %v361_v2 = vsel %vm117_vm0, %v321_v13, 0.0  ;;  %v325_v13 = vmul.f32 %v300_v50, %v300_v50  ;;  %v367_v51 = vsel %vm117_vm0, %v324_v17, 0.0 }
  0x70   :  { %v371_v50 = vsel %vm117_vm0, %v326_v26, 0.0 }
  0x71   :  { %v358_v43 = vadd.f32 %v357_v11, %v356_v3  ;;  %v363_v11 = vsel %vm117_vm0, %v322_v21, 0.0  ;;  %v304_v21 = vmul.f32 %v1157_v16, %v928_v46  ;;  %v369_v42 = vsel %vm117_vm0, %v325_v13, 0.0 }
  0x73   :  { %v360_v31 = vadd.f32 %v359_v20, %v358_v43  ;;  %v365_v20 = vsel %vm117_vm0, %v323_v1, 0.0  ;;  %v329_v1 = vmul.f32 %v304_v21, %v304_v21 }
  0x75   :  { %v362_v3 = vadd.f32 %v361_v2, %v360_v31  ;;  %v327_v2 = vmul.f32 %v302_v36, %v302_v36  ;;  %v377_v17 = vsel %vm117_vm0, %v329_v1, 0.0 }
  0x77   :  { %v364_v43 = vadd.f32 %v363_v11, %v362_v3  ;;  %v373_v11 = vsel %vm117_vm0, %v327_v2, 0.0 }
  0x79   :  { %v366_v60 = vadd.f32 %v365_v20, %v364_v43 }
  0x7b   :  { %v368_v31 = vadd.f32 %v367_v51, %v366_v60 }
  0x7d   :  { %v370_v12 = vadd.f32 %v369_v42, %v368_v31 }
  0x7f   :  { %v372_v3 = vadd.f32 %v371_v50, %v370_v12  ;;  %v1178_v12 = vld [vmem:[%s1462_s2] ss:$0 sm:$0xff] }
  0x81   :  { %v374_v48 = vadd.f32 %v373_v11, %v372_v3 }
  0x83   :  { %v376_v20 = vadd.f32 %v375_v57, %v374_v48 }
  0x85   :  { %v378_v43 = vadd.f32 %v377_v17, %v376_v20 }
  0x87   :  { %v379_v46 = vrot.slane %v378_v43, 4 }
  0x89   :  { %v380_v36 = vadd.f32 %v379_v46, %v378_v43 }
  0x8b   :  { %v381_v16 = vrot.slane %v380_v36, 2 }
  0x8d   :  { %v382_v13 = vadd.f32 %v381_v16, %v380_v36 }
  0x8f   :  { %v383_v60 = vrot.slane %v382_v13, 1 }
  0x91   :  { %v384_v44 = vadd.f32 %v383_v60, %v382_v13 }
  0x93   :  { %v385_v26 = vmul.f32 %v992_v40, %v384_v44  ;;  %v1191_v40 = vld [vmem:[%s1463_s3] ss:$0 sm:$0xff] }
  0x95   :  { %v386_v51 = vadd.f32 1e-05, %v385_v26 }
  0x97   :  { %644 = vrsqrt.f32 %v386_v51 }
  0xa1   :  { %v1173_v21 = vpop.eup %644 }
  0xa2   :  { %v389_v48 = vmul.f32 %v1173_v21, %v999_v59  ;;  %v390_v46 = vmul.f32 %v1173_v21, %v1003_v15  ;;  %v391_v16 = vmul.f32 %v1173_v21, %v1007_v25  ;;  %v392_v22 = vmul.f32 %v1173_v21, %v1011_v27 }
  0xa3   :  { %v393_v2 = vmul.f32 %v1173_v21, %v1017_v54  ;;  %v394_v59 = vmul.f32 %v1173_v21, %v1025_v29  ;;  %v395_v15 = vmul.f32 %v1173_v21, %v1031_v61  ;;  %v396_v25 = vmul.f32 %v1173_v21, %v1037_v52 }
  0xa4   :  { %v420_v42 = vmul.f32 %v1178_v12, %v389_v48  ;;  %v421_v27 = vmul.f32 %v1178_v12, %v390_v46  ;;  %v422_v31 = vmul.f32 %v1178_v12, %v391_v16  ;;  %v423_v50 = vmul.f32 %v1178_v12, %v392_v22 }
  0xa5   :  { %v424_v1 = vmul.f32 %v1178_v12, %v393_v2  ;;  %v425_v54 = vmul.f32 %v1178_v12, %v394_v59  ;;  %v426_v29 = vmul.f32 %v1178_v12, %v395_v15  ;;  %v427_v11 = vmul.f32 %v1178_v12, %v396_v25  ;;  %v1559_v59 = vld [vmem:[#allocation2_spill] sm:$0xff]  ;;  %v1560_v25 = vld [vmem:[#allocation3_spill] sm:$0xff] }
  0xa6   :  { %v452_v61 = vadd.f32 %v1191_v40, %v420_v42  ;;  %v453_v52 = vadd.f32 %v1191_v40, %v421_v27  ;;  %v454_v3 = vadd.f32 %v1191_v40, %v422_v31  ;;  %v455_v57 = vadd.f32 %v1191_v40, %v423_v50  ;;  %v1561_v27 = vld [vmem:[#allocation4_spill] sm:$0xff]  ;;  %v1562_v50 = vld [vmem:[#allocation5_spill] sm:$0xff] }
  0xa7   :  { %v456_v17 = vadd.f32 %v1191_v40, %v424_v1  ;;  %v457_v20 = vadd.f32 %v1191_v40, %v425_v54  ;;  %v458_v43 = vadd.f32 %v1191_v40, %v426_v29  ;;  %v459_v36 = vadd.f32 %v1191_v40, %v427_v11  ;;  %v1563_v54 = vld [vmem:[#allocation6_spill] sm:$0xff] }
  0xa8   :  { %v477_v13 = vsub.f32 %v452_v61, %v711_v30  ;;  %v478_v60 = vsub.f32 %v453_v52, %v716_v32  ;;  %v479_v44 = vsub.f32 %v454_v3, %v721_v33  ;;  %v480_v26 = vsub.f32 %v455_v57, %v733_v39 }
  0xa9   :  { %v481_v51 = vsub.f32 %v456_v17, %v748_v47  ;;  %v482_v48 = vsub.f32 %v457_v20, %v759_v53  ;;  %v483_v46 = vsub.f32 %v458_v43, %v773_v62  ;;  %v484_v16 = vsub.f32 %v459_v36, %v788_v10 }
  0xaa   :  { %v502_v22 = vmul.f32 %v477_v13, %v677_v7  ;;  %v503_v2 = vmul.f32 %v478_v60, %v679_v8  ;;  %v504_v15 = vmul.f32 %v479_v44, %v1559_v59  ;;  %v505_v42 = vmul.f32 %v480_v26, %v1560_v25 }
  0xab   :  { %v506_v31 = vmul.f32 %v481_v51, %v1561_v27  ;;  %v507_v1 = vmul.f32 %v482_v48, %v1562_v50  ;;  %v508_v29 = vmul.f32 %v483_v46, %v1563_v54  ;;  %v509_v11 = vmul.f32 %v484_v16, %v704_v28  ;;  %v1564_v48 = vld [vmem:[#allocation12_spill] sm:$0xff] }
  0xac   :  { %v527_v61 = vadd.f32 %v502_v22, %v711_v30  ;;  %v528_v52 = vadd.f32 %v503_v2, %v716_v32  ;;  %v529_v7 = vadd.f32 %v504_v15, %v721_v33  ;;  %v530_v8 = vadd.f32 %v505_v42, %v733_v39  ;;  %v1565_v22 = vld [vmem:[#allocation13_spill] sm:$0xff] }
  0xad   :  { %v531_v3 = vadd.f32 %v506_v31, %v748_v47  ;;  %v532_v57 = vadd.f32 %v507_v1, %v759_v53  ;;  %v533_v17 = vadd.f32 %v508_v29, %v773_v62  ;;  %v534_v20 = vadd.f32 %v509_v11, %v788_v10  ;;  %v1566_v31 = vld [vmem:[#allocation7_spill] sm:$0xff]  ;;  %v1567_v1 = vld [vmem:[#allocation8_spill] sm:$0xff]  ;;  %v1568_v29 = vld [vmem:[#allocation9_spill] sm:$0xff] }
  0xae   :  { %552 = vst.msk [vmem:[%s1464_s4] sm:$0xff] %vm117_vm0, %v527_v61  ;;  %553 = vst.msk [vmem:[%s1464_s4 + $0x8] sm:$0xff] %vm117_vm0, %v528_v52  ;;  %v397_v28 = vmul.f32 %v1173_v21, %v1043_v18  ;;  %v398_v30 = vmul.f32 %v1173_v21, %v1052_v9  ;;  %v399_v32 = vmul.f32 %v1173_v21, %v1059_v24  ;;  %v1569_v61 = vld [vmem:[#allocation10_spill] sm:$0xff] }
  0xaf   :  { %554 = vst.msk [vmem:[%s1464_s4 + $0x10] sm:$0xff] %vm117_vm0, %v529_v7  ;;  %555 = vst.msk [vmem:[%s1464_s4 + $0x18] sm:$0xff] %vm117_vm0, %v530_v8  ;;  %v400_v33 = vmul.f32 %v1173_v21, %v1066_v4  ;;  %v401_v9 = vmul.f32 %v1173_v21, %v1073_v45  ;;  %v402_v24 = vmul.f32 %v1173_v21, %v1080_v35  ;;  %v1570_v7 = vld [vmem:[#allocation11_spill] sm:$0xff] }
  0xb0   :  { %556 = vst.msk [vmem:[%s1464_s4 + $0x20] sm:$0xff] %vm117_vm0, %v531_v3  ;;  %557 = vst.msk [vmem:[%s1464_s4 + $0x28] sm:$0xff] %vm117_vm0, %v532_v57  ;;  %v403_v39 = vmul.f32 %v1173_v21, %v1087_v41  ;;  %v404_v47 = vmul.f32 %v1173_v21, %v1094_v49  ;;  %v428_v53 = vmul.f32 %v1178_v12, %v397_v28 }
  0xb1   :  { %558 = vst.msk [vmem:[%s1464_s4 + $0x30] sm:$0xff] %vm117_vm0, %v533_v17  ;;  %559 = vst.msk [vmem:[%s1464_s4 + $0x38] sm:$0xff] %vm117_vm0, %v534_v20  ;;  %v429_v62 = vmul.f32 %v1178_v12, %v398_v30  ;;  %v430_v10 = vmul.f32 %v1178_v12, %v399_v32  ;;  %v431_v18 = vmul.f32 %v1178_v12, %v400_v33 }
  0xb2   :  { %v432_v4 = vmul.f32 %v1178_v12, %v401_v9  ;;  %v433_v45 = vmul.f32 %v1178_v12, %v402_v24  ;;  %v434_v35 = vmul.f32 %v1178_v12, %v403_v39  ;;  %v435_v43 = vmul.f32 %v1178_v12, %v404_v47 }
  0xb3   :  { %v460_v41 = vadd.f32 %v1191_v40, %v428_v53  ;;  %v461_v49 = vadd.f32 %v1191_v40, %v429_v62  ;;  %v462_v36 = vadd.f32 %v1191_v40, %v430_v10  ;;  %v463_v13 = vadd.f32 %v1191_v40, %v431_v18 }
  0xb4   :  { %v464_v60 = vadd.f32 %v1191_v40, %v432_v4  ;;  %v465_v44 = vadd.f32 %v1191_v40, %v433_v45  ;;  %v466_v26 = vadd.f32 %v1191_v40, %v434_v35  ;;  %v467_v51 = vadd.f32 %v1191_v40, %v435_v43 }
  0xb5   :  { %v485_v46 = vsub.f32 %v460_v41, %v1564_v48  ;;  %v486_v16 = vsub.f32 %v461_v49, %v812_v34  ;;  %v487_v2 = vsub.f32 %v462_v36, %v1565_v22  ;;  %v488_v59 = vsub.f32 %v463_v13, %v839_v58 }
  0xb6   :  { %v489_v15 = vsub.f32 %v464_v60, %v851_v5  ;;  %v490_v25 = vsub.f32 %v465_v44, %v863_v19  ;;  %v491_v42 = vsub.f32 %v466_v26, %v875_v38  ;;  %v492_v27 = vsub.f32 %v467_v51, %v890_v56  ;;  %v1575_v26 = vld [vmem:[#allocation20_spill] sm:$0xff] }
  0xb7   :  { %v510_v50 = vmul.f32 %v485_v46, %v1566_v31  ;;  %v511_v54 = vmul.f32 %v486_v16, %v1567_v1  ;;  %v512_v11 = vmul.f32 %v487_v2, %v1568_v29  ;;  %v513_v52 = vmul.f32 %v488_v59, %v1569_v61  ;;  %v1577_v16 = vld [vmem:[#allocation24_spill] sm:$0xff]  ;;  %v1578_v2 = vld [vmem:[#allocation26_spill] sm:$0xff]  ;;  %v1581_v31 = vld [vmem:[#allocation29_spill] sm:$0xff] }
  0xb8   :  { %v514_v8 = vmul.f32 %v489_v15, %v1570_v7  ;;  %v515_v3 = vmul.f32 %v490_v25, %v790_v14  ;;  %v516_v57 = vmul.f32 %v491_v42, %v802_v23  ;;  %v517_v17 = vmul.f32 %v492_v27, %v814_v37  ;;  %v1579_v15 = vld [vmem:[#allocation27_spill] sm:$0xff]  ;;  %v1580_v42 = vld [vmem:[#allocation28_spill] sm:$0xff]  ;;  %v1582_v1 = vld [vmem:[#allocation30_spill] sm:$0xff] }
  0xb9   :  { %v535_v20 = vadd.f32 %v510_v50, %v1564_v48  ;;  %v536_v28 = vadd.f32 %v511_v54, %v812_v34  ;;  %v537_v30 = vadd.f32 %v512_v11, %v1565_v22  ;;  %v538_v32 = vadd.f32 %v513_v52, %v839_v58  ;;  %v1571_v34 = vld [vmem:[#allocation32_spill] sm:$0xff]  ;;  %v1572_v58 = vld [vmem:[#allocation33_spill] sm:$0xff]  ;;  %v1576_v48 = vld [vmem:[#allocation22_spill] sm:$0xff] }
  0xba   :  { %v539_v33 = vadd.f32 %v514_v8, %v851_v5  ;;  %v540_v9 = vadd.f32 %v515_v3, %v863_v19  ;;  %v541_v24 = vadd.f32 %v516_v57, %v875_v38  ;;  %v542_v14 = vadd.f32 %v517_v17, %v890_v56  ;;  %v1573_v19 = vld [vmem:[#allocation34_spill] sm:$0xff]  ;;  %v1584_v61 = vld [vmem:[#allocation15_spill] sm:$0xff]  ;;  %v1585_v7 = vld [vmem:[#allocation16_spill] sm:$0xff] }
  0xbb   :  { %560 = vst.msk [vmem:[%s1464_s4 + $0x40] sm:$0xff] %vm117_vm0, %v535_v20  ;;  %561 = vst.msk [vmem:[%s1464_s4 + $0x48] sm:$0xff] %vm117_vm0, %v536_v28  ;;  %v405_v23 = vmul.f32 %v1173_v21, %v1101_v55  ;;  %v406_v37 = vmul.f32 %v1173_v21, %v1571_v34  ;;  %v407_v5 = vmul.f32 %v1173_v21, %v1572_v58  ;;  %v1574_v55 = vld [vmem:[#allocation35_spill] sm:$0xff]  ;;  %v1583_v29 = vld [vmem:[#allocation14_spill] sm:$0xff] }
  0xbc   :  { %562 = vst.msk [vmem:[%s1464_s4 + $0x50] sm:$0xff] %vm117_vm0, %v537_v30  ;;  %563 = vst.msk [vmem:[%s1464_s4 + $0x58] sm:$0xff] %vm117_vm0, %v538_v32  ;;  %v408_v38 = vmul.f32 %v1173_v21, %v1573_v19  ;;  %v409_v56 = vmul.f32 %v1173_v21, %v1574_v55  ;;  %v410_v39 = vmul.f32 %v1173_v21, %v1136_v63  ;;  %v1586_v3 = vld [vmem:[#allocation17_spill] sm:$0xff]  ;;  %v1587_v17 = vld [vmem:[#allocation18_spill] sm:$0xff] }
  0xbd   :  { %564 = vst.msk [vmem:[%s1464_s4 + $0x60] sm:$0xff] %vm117_vm0, %v539_v33  ;;  %565 = vst.msk [vmem:[%s1464_s4 + $0x68] sm:$0xff] %vm117_vm0, %v540_v9  ;;  %v411_v47 = vmul.f32 %v1173_v21, %v1143_v0  ;;  %v412_v53 = vmul.f32 %v1173_v21, %v1150_v6  ;;  %v436_v62 = vmul.f32 %v1178_v12, %v405_v23  ;;  %v1588_v28 = vld [vmem:[#allocation19_spill] sm:$0xff]  ;;  %v1589_v32 = vld [vmem:[#allocation21_spill] sm:$0xff] }
  0xbe   :  { %566 = vst.msk [vmem:[%s1464_s4 + $0x70] sm:$0xff] %vm117_vm0, %v541_v24  ;;  %567 = vst.msk [vmem:[%s1464_s4 + $0x78] sm:$0xff] %vm117_vm0, %v542_v14  ;;  %v437_v10 = vmul.f32 %v1178_v12, %v406_v37  ;;  %v438_v18 = vmul.f32 %v1178_v12, %v407_v5  ;;  %v439_v4 = vmul.f32 %v1178_v12, %v408_v38  ;;  %v1590_v9 = vld [vmem:[#allocation23_spill] sm:$0xff]  ;;  %v1591_v55 = vld [vmem:[#allocation36_spill] sm:$0xff] }
  0xbf   :  { %v440_v45 = vmul.f32 %v1178_v12, %v409_v56  ;;  %v441_v35 = vmul.f32 %v1178_v12, %v410_v39  ;;  %v442_v63 = vmul.f32 %v1178_v12, %v411_v47  ;;  %v443_v43 = vmul.f32 %v1178_v12, %v412_v53  ;;  %v1592_v47 = vld [vmem:[#allocation31_spill] sm:$0xff] }
  0xc0   :  { %v468_v0 = vadd.f32 %v1191_v40, %v436_v62  ;;  %v469_v6 = vadd.f32 %v1191_v40, %v437_v10  ;;  %v470_v41 = vadd.f32 %v1191_v40, %v438_v18  ;;  %v471_v49 = vadd.f32 %v1191_v40, %v439_v4  ;;  %v1593_v62 = vld [vmem:[#allocation25_spill] sm:$0xff] }
  0xc1   :  { %v472_v36 = vadd.f32 %v1191_v40, %v440_v45  ;;  %v473_v13 = vadd.f32 %v1191_v40, %v441_v35  ;;  %v474_v60 = vadd.f32 %v1191_v40, %v442_v63  ;;  %v475_v44 = vadd.f32 %v1191_v40, %v443_v43 }
  0xc2   :  { %v493_v51 = vsub.f32 %v468_v0, %v1575_v26  ;;  %v494_v46 = vsub.f32 %v469_v6, %v1576_v48  ;;  %v495_v22 = vsub.f32 %v470_v41, %v1577_v16  ;;  %v496_v59 = vsub.f32 %v471_v49, %v1578_v2 }
  0xc3   :  { %v497_v25 = vsub.f32 %v472_v36, %v1579_v15  ;;  %v498_v27 = vsub.f32 %v473_v13, %v1580_v42  ;;  %v499_v50 = vsub.f32 %v474_v60, %v1581_v31  ;;  %v500_v54 = vsub.f32 %v475_v44, %v1582_v1 }
  0xc4   :  { %v518_v11 = vmul.f32 %v493_v51, %v1583_v29  ;;  %v519_v52 = vmul.f32 %v494_v46, %v1584_v61  ;;  %v520_v8 = vmul.f32 %v495_v22, %v1585_v7  ;;  %v521_v57 = vmul.f32 %v496_v59, %v1586_v3 }
  0xc5   :  { %v522_v20 = vmul.f32 %v497_v25, %v1587_v17  ;;  %v523_v30 = vmul.f32 %v498_v27, %v1588_v28  ;;  %v524_v33 = vmul.f32 %v499_v50, %v1589_v32  ;;  %v525_v24 = vmul.f32 %v500_v54, %v1590_v9 }
  0xc6   :  { %v543_v14 = vadd.f32 %v518_v11, %v1575_v26  ;;  %v544_v23 = vadd.f32 %v519_v52, %v1576_v48  ;;  %v545_v34 = vadd.f32 %v520_v8, %v1577_v16  ;;  %v546_v37 = vadd.f32 %v521_v57, %v1578_v2 }
  0xc7   :  { %v547_v58 = vadd.f32 %v522_v20, %v1579_v15  ;;  %v548_v5 = vadd.f32 %v523_v30, %v1580_v42  ;;  %v549_v19 = vadd.f32 %v524_v33, %v1581_v31  ;;  %v550_v38 = vadd.f32 %v525_v24, %v1582_v1 }
  0xc8   :  { %568 = vst.msk [vmem:[%s1464_s4 + $0x80] sm:$0xff] %vm117_vm0, %v543_v14  ;;  %569 = vst.msk [vmem:[%s1464_s4 + $0x88] sm:$0xff] %vm117_vm0, %v544_v23  ;;  %v413_v56 = vmul.f32 %v1173_v21, %v1591_v55 }
  0xc9   :  { %570 = vst.msk [vmem:[%s1464_s4 + $0x90] sm:$0xff] %vm117_vm0, %v545_v34  ;;  %571 = vst.msk [vmem:[%s1464_s4 + $0x98] sm:$0xff] %vm117_vm0, %v546_v37 }
  0xca   :  { %572 = vst.msk [vmem:[%s1464_s4 + $0xa0] sm:$0xff] %vm117_vm0, %v547_v58  ;;  %573 = vst.msk [vmem:[%s1464_s4 + $0xa8] sm:$0xff] %vm117_vm0, %v548_v5  ;;  %v444_v21 = vmul.f32 %v1178_v12, %v413_v56 }
  0xcb   :  { %574 = vst.msk [vmem:[%s1464_s4 + $0xb0] sm:$0xff] %vm117_vm0, %v549_v19  ;;  %575 = vst.msk [vmem:[%s1464_s4 + $0xb8] sm:$0xff] %vm117_vm0, %v550_v38 }
  0xcc   :  { %v476_v39 = vadd.f32 %v1191_v40, %v444_v21 }
  0xce   :  { %v501_v53 = vsub.f32 %v476_v39, %v1592_v47 }
  0xd0   :  { %v526_v10 = vmul.f32 %v501_v53, %v1593_v62 }
  0xd2   :  { %v551_v18 = vadd.f32 %v526_v10, %v1592_v47 }
  0xd4   :  { %576 = vst.msk [vmem:[%s1464_s4 + $0xc0] sm:$0xff] %vm117_vm0, %v551_v18 }

</bundles_post_ra>
